<compile_context>
chip_gen: v5e
topology: v5e:2x2
jax: 0.10.0
libtpu: 0.0.40
codegen_flags: <defaults>
</compile_context>

<pallas_src>
import functools

import numpy as np

import jax
import jax.numpy as jnp
from jax.experimental import pallas as pl
from jax.experimental.pallas import tpu as pltpu


def _round_up(x, m):
    return ((x + m - 1) // m) * m


_TAPS = [(dh - 1, dw - 1) for dh in range(3) for dw in range(3)]   # raster (dy, dx)


# -----------------------------------------------------------------------------
# Fused Pallas kernel: 2 x (conv3x3 + channel-softmax gating).
# One grid step == one lane-flattened batch tile; the intermediate activation
# never leaves VMEM.
# -----------------------------------------------------------------------------
def _fused_upsampler_kernel(x_ref, mask_ref, w1_ref, b1_ref, w2_ref, b2_ref,
                            o_ref, *, W, cp2):
    # x_ref   : (1, cp1, L)   f32, L = B_tile*H*W, channels zero-padded to cp1
    # mask_ref: (9, L)        f32 0/1, per-tap validity (resident, DMA'd once)
    # w*_ref  : (Cout, Kp)    bf16 matmul-layout weights, K zero-padded to 128*n
    # b*_ref  : (Cout, 1)     f32 bias (sublane resident, lane broadcast)
    # o_ref   : (1, Cout, L)  lane-dense output slab
    L = x_ref.shape[-1]

    def conv3x3(x_cp, w_ref, b_ref):
        # x_cp: (cp, L) f32 with cp a multiple of 8 -> (Cout, L) f32
        cp = x_cp.shape[0]
        kp = w_ref.shape[1]
        pieces = []
        for t, (dy, dx) in enumerate(_TAPS):
            off = dy * W + dx
            if off == 0:
                pieces.append(x_cp)                       # center tap: always valid
            else:
                # roll[l] == x_cp[(l + off) % L]; wrap-around / cross-image reads
                # are zeroed by the tap mask (in-register, XLU slot; no staging
                # buffer, no memset, no unaligned VMEM reloads).
                rolled = pltpu.roll(x_cp, shift=(-off) % L, axis=1)
                pieces.append(rolled * mask_ref[pl.ds(t, 1), :])
        if kp > 9 * cp:                                   # pad K to the 128-lane tile
            pieces.append(jnp.zeros((kp - 9 * cp, L), jnp.float32))
        im2col = jnp.concatenate(pieces, axis=0).astype(jnp.bfloat16)   # (Kp, L)
        acc = jnp.dot(w_ref[...], im2col,
                      preferred_element_type=jnp.float32)               # one MXU matmul
        return acc + b_ref[...]                                          # (Cout, L) f32

    def softmax_gate(y):
        # softmax over channels (sublane axis), then gate: y * softmax(y).
        m = jnp.max(y, axis=0, keepdims=True)
        e = jnp.exp(y - m)
        s = jnp.sum(e, axis=0, keepdims=True)
        return y * e * pl.reciprocal(s, approx=True)

    x1 = x_ref[0].astype(jnp.float32)                     # (cp1, L)
    y1 = softmax_gate(conv3x3(x1, w1_ref, b1_ref))        # (C2, L)  -- stays in VMEM
    c2 = y1.shape[0]
    if cp2 > c2:                                          # pad channels to sublane tile
        y1 = jnp.concatenate(
            [y1, jnp.zeros((cp2 - c2, L), jnp.float32)], axis=0)
    y2 = softmax_gate(conv3x3(y1, w2_ref, b2_ref))        # (Cout, L)
    o_ref[0] = y2.astype(o_ref.dtype)


# -----------------------------------------------------------------------------
# Wrapper-side glue (trace-time layout plumbing only).
# -----------------------------------------------------------------------------
def _conv_weight_to_matmul(w_hwio, cp, kp):
    """(3,3,Cin,Cout) HWIO -> (Cout, kp) bf16 matmul layout (Cin padded to cp,
    K padded to kp so the weight tile load is a full unmasked 128-lane vreg)."""
    kh, kw, cin, cout = w_hwio.shape
    w = jnp.transpose(w_hwio, (3, 0, 1, 2))                    # (Cout, 3, 3, Cin)
    w = jnp.pad(w, ((0, 0), (0, 0), (0, 0), (0, cp - cin)))    # Cin -> cp
    w = w.reshape(cout, kh * kw * cp)
    w = jnp.pad(w, ((0, 0), (0, kp - kh * kw * cp)))           # K -> kp
    return w.astype(jnp.bfloat16)


def _tap_masks_np(H, W, bt):
    """(9, bt*H*W) f32 validity mask per conv tap, tiled per image in the lane axis."""
    pos = np.arange(H * W)
    row, col = pos // W, pos % W
    m = np.stack([(row + dy >= 0) & (row + dy < H) & (col + dx >= 0) & (col + dx < W)
                  for dy, dx in _TAPS]).astype(np.float32)     # (9, H*W)
    return np.tile(m, (1, bt))                                 # (9, bt*H*W)


def _choose_batch_tile(B, HW, max_lanes=4096):
    """Largest divisor of B s.t. the grid keeps >=2 steps (v7x dual-TC) and the
    lane extent stays within a modest vreg / im2col budget."""
    best = 1
    for bt in range(1, B + 1):
        if B % bt:
            continue
        if bt * HW > max_lanes:
            continue
        if B >= 2 and (B // bt) < 2:
            continue
        best = bt
    return best


def pixel_shuffle_nchw(x, s):
    """Exactly torch.nn.PixelShuffle on NCHW."""
    B, C, H, W = x.shape
    Co = C // (s * s)
    x = x.reshape(B, Co, s, s, H, W)
    x = x.transpose(0, 1, 4, 2, 5, 3)
    return x.reshape(B, Co, H * s, W * s)


@functools.partial(jax.jit, static_argnames=("scale",))
def upsampler_forward(x_nchw, params, scale):
    # TODO(synk): the pixel-shuffle gather itself stays as plain-JAX glue; folding
    # it into the kernel would need a strided lane scatter and only matters at
    # much larger sizes.
    x = pixel_shuffle_nchw(x_nchw, scale)                      # (B, C1, Hs, Ws) NCHW
    B, C1, Hs, Ws = x.shape
    HW = Hs * Ws

    w1, b1 = params["w1"], params["b1"]                        # (3,3,C1,C2),   (C2,)
    w2, b2 = params["w2"], params["b2"]                        # (3,3,C2,Cout), (Cout,)
    C2, Cout = w1.shape[-1], w2.shape[-1]
    cp1, cp2 = _round_up(C1, 8), _round_up(C2, 8)
    kp1, kp2 = _round_up(9 * cp1, 128), _round_up(9 * cp2, 128)

    bt = _choose_batch_tile(B, HW)                             # images per grid step
    n_steps = B // bt
    L = bt * HW

    # Lane-flattened, channel-padded input: (n_steps, cp1, bt*HW).
    xf = jnp.pad(x.reshape(B, C1, HW), ((0, 0), (0, cp1 - C1), (0, 0)))
    xf = xf.reshape(n_steps, bt, cp1, HW).transpose(0, 2, 1, 3).reshape(n_steps, cp1, L)

    mask = jnp.asarray(_tap_masks_np(Hs, Ws, bt))              # (9, L) f32 constant
    w1m = _conv_weight_to_matmul(w1, cp1, kp1)                 # (C2,  kp1) bf16
    w2m = _conv_weight_to_matmul(w2, cp2, kp2)                 # (Cout,kp2) bf16
    b1c = b1.reshape(C2, 1).astype(jnp.float32)
    b2c = b2.reshape(Cout, 1).astype(jnp.float32)

    kernel = functools.partial(_fused_upsampler_kernel, W=Ws, cp2=cp2)
    out_flat = pl.pallas_call(
        kernel,
        out_shape=jax.ShapeDtypeStruct((n_steps, Cout, L), x.dtype),
        grid_spec=pltpu.PrefetchScalarGridSpec(
            num_scalar_prefetch=0,
            # One lane-flattened batch tile per step.  For large images add a
            # row-tile grid axis (1-row halo) and budget the 9x bf16 im2col
            # expansion against v7x's 64 MiB (32 MiB scoped) VMEM vs 128 MiB on
            # v5e/v6e; at these sizes everything fits trivially.
            grid=(n_steps,),
            in_specs=[
                pl.BlockSpec((1, cp1, L), lambda i: (i, 0, 0)),     # x tile
                pl.BlockSpec((9, L), lambda i: (0, 0)),             # tap masks (resident)
                pl.BlockSpec((C2, kp1), lambda i: (0, 0)),          # w1 (resident)
                pl.BlockSpec((C2, 1), lambda i: (0, 0)),            # b1
                pl.BlockSpec((Cout, kp2), lambda i: (0, 0)),        # w2
                pl.BlockSpec((Cout, 1), lambda i: (0, 0)),          # b2
            ],
            out_specs=pl.BlockSpec((1, Cout, L), lambda i: (i, 0, 0)),
        ),
        compiler_params=pltpu.CompilerParams(
            # batch-tile axis is independent -> shards across v7x's 2 TCs.
            dimension_semantics=("parallel",)),
    )(xf, mask, w1m, b1c, w2m, b2c)

    out = out_flat.reshape(n_steps, Cout, bt, HW).transpose(0, 2, 1, 3)
    return out.reshape(B, Cout, Hs, Ws)                        # NCHW, matches PyTorch


# -----------------------------------------------------------------------------
# Deterministic parameter init (Conv2d-style uniform(-1/sqrt(fan_in), ...)).
# -----------------------------------------------------------------------------
def init_upsampler_params(key, in_channels, out_channels, scale):
    c1 = in_channels // (scale * scale)   # WindowAttention-1 input channels
    c2 = in_channels // scale             # WA-1 output / WA-2 input channels
    k1, k2, k3, k4 = jax.random.split(key, 4)

    def conv_init(kw_, kb_, cin, cout):
        bound = (cin * 9.0) ** -0.5
        w = jax.random.uniform(kw_, (3, 3, cin, cout), jnp.float32, -bound, bound)
        b = jax.random.uniform(kb_, (cout,), jnp.float32, -bound, bound)
        return w, b

    w1, b1 = conv_init(k1, k2, c1, c2)
    w2, b2 = conv_init(k3, k4, c2, out_channels)
    return {"w1": w1, "b1": b1, "w2": w2, "b2": b2}


# -----------------------------------------------------------------------------
# Pure-JAX reference (same intended semantics) for a correctness check.
# -----------------------------------------------------------------------------
def _window_attention_ref(x_nhwc, w, b):
    y = jax.lax.conv_general_dilated(
        x_nhwc, w, window_strides=(1, 1), padding="SAME",
        dimension_numbers=("NHWC", "HWIO", "NHWC"),
    ) + b
    att = jax.nn.softmax(y, axis=-1)
    return y * att


def _upsampler_ref(x_nchw, params, scale):
    x = pixel_shuffle_nchw(x_nchw, scale)
    x = jnp.transpose(x, (0, 2, 3, 1))
    x = _window_attention_ref(x, params["w1"], params["b1"])
    x = _window_attention_ref(x, params["w2"], params["b2"])
    return jnp.transpose(x, (0, 3, 1, 2))


if __name__ == "__main__":
    key = jax.random.PRNGKey(0)
    kx, kp_ = jax.random.split(key)

    B, in_channels, H, W = 2, 16, 8, 8
    scale, out_channels = 2, 8
    params = init_upsampler_params(kp_, in_channels, out_channels, scale)

    # Config 1: nominal small shape (B=2 -> 2 parallel grid steps, B_tile=1).
    x = jax.random.normal(kx, (B, in_channels, H, W), jnp.float32)
    y = jax.block_until_ready(upsampler_forward(x, params, scale))
    assert y.shape == (B, out_channels, H * scale, W * scale), y.shape
    y_ref = _upsampler_ref(x, params, scale)
    err = float(jnp.max(jnp.abs(y - y_ref)))
    # Tolerance covers bf16 MXU inputs + approx-reciprocal softmax; everything
    # else is exact f32.
    assert jnp.allclose(y, y_ref, rtol=2e-2, atol=3e-3), (
        f"mismatch vs JAX reference (max abs err = {err:.3e})")

    # Config 2: larger batch exercises B_tile > 1 (several images flattened into
    # the lane axis per step, incl. cross-image roll wrap-around masking).
    x8 = jax.random.normal(kx, (8, in_channels, H, W), jnp.float32)
    y8 = jax.block_until_ready(upsampler_forward(x8, params, scale))
    y8_ref = _upsampler_ref(x8, params, scale)
    err8 = float(jnp.max(jnp.abs(y8 - y8_ref)))
    assert jnp.allclose(y8, y8_ref, rtol=2e-2, atol=3e-3), (
        f"batched mismatch vs JAX reference (max abs err = {err8:.3e})")

    print("KERNEL_OK")
</pallas_src>

<mosaic_0001>
module attributes {stable_mosaic.version = 11 : i64} {
  func.func @_fused_upsampler_kernel(%arg0: i32, %arg1: memref<1x8x256xf32, #tpu.memory_space<vmem>>, %arg2: memref<9x256xf32, #tpu.memory_space<vmem>>, %arg3: memref<8x128xbf16, #tpu.memory_space<vmem>>, %arg4: memref<8x1xf32, #tpu.memory_space<vmem>>, %arg5: memref<8x128xbf16, #tpu.memory_space<vmem>>, %arg6: memref<8x1xf32, #tpu.memory_space<vmem>>, %arg7: memref<1x8x256xf32, #tpu.memory_space<vmem>>) attributes {dimension_semantics = [#tpu.dimension_semantics<parallel>], iteration_bounds = array<i64: 2>, scalar_prefetch = 0 : i64, scratch_operands = 0 : i64, tpu.core_type = #tpu.core_type<tc>, window_params = [{transform_indices = @transform_0, window_bounds = array<i64: 1, 8, 256>}, {pipeline_mode = #tpu.pipeline_mode<synchronous>, transform_indices = @transform_1, window_bounds = array<i64: 9, 256>}, {pipeline_mode = #tpu.pipeline_mode<synchronous>, transform_indices = @transform_2, window_bounds = array<i64: 8, 128>}, {pipeline_mode = #tpu.pipeline_mode<synchronous>, transform_indices = @transform_3, window_bounds = array<i64: 8, 1>}, {pipeline_mode = #tpu.pipeline_mode<synchronous>, transform_indices = @transform_4, window_bounds = array<i64: 8, 128>}, {pipeline_mode = #tpu.pipeline_mode<synchronous>, transform_indices = @transform_5, window_bounds = array<i64: 8, 1>}, {transform_indices = @transform_6, window_bounds = array<i64: 1, 8, 256>}]} {
    %c0 = arith.constant 0 : index
    %c0_0 = arith.constant 0 : index
    %c0_1 = arith.constant 0 : index
    %0 = vector.load %arg1[%c0, %c0_0, %c0_1] : memref<1x8x256xf32, #tpu.memory_space<vmem>>, vector<1x8x256xf32>
    %1 = vector.shape_cast %0 : vector<1x8x256xf32> to vector<8x256xf32>
    %c17_i32 = arith.constant 17 : i32
    %2 = tpu.dynamic_rotate %1 by %c17_i32 dim 1 : vector<8x256xf32>, i32 -> vector<8x256xf32>
    %c0_2 = arith.constant 0 : index
    %c0_3 = arith.constant 0 : index
    %3 = vector.load %arg2[%c0_2, %c0_3] : memref<9x256xf32, #tpu.memory_space<vmem>>, vector<1x256xf32>
    %4 = vector.broadcast %3 : vector<1x256xf32> to vector<8x256xf32>
    %5 = arith.mulf %2, %4 : vector<8x256xf32>
    %c16_i32 = arith.constant 16 : i32
    %6 = tpu.dynamic_rotate %1 by %c16_i32 dim 1 : vector<8x256xf32>, i32 -> vector<8x256xf32>
    %c1 = arith.constant 1 : index
    %c0_4 = arith.constant 0 : index
    %7 = vector.load %arg2[%c1, %c0_4] : memref<9x256xf32, #tpu.memory_space<vmem>>, vector<1x256xf32>
    %8 = vector.broadcast %7 : vector<1x256xf32> to vector<8x256xf32>
    %9 = arith.mulf %6, %8 : vector<8x256xf32>
    %c15_i32 = arith.constant 15 : i32
    %10 = tpu.dynamic_rotate %1 by %c15_i32 dim 1 : vector<8x256xf32>, i32 -> vector<8x256xf32>
    %c2 = arith.constant 2 : index
    %c0_5 = arith.constant 0 : index
    %11 = vector.load %arg2[%c2, %c0_5] : memref<9x256xf32, #tpu.memory_space<vmem>>, vector<1x256xf32>
    %12 = vector.broadcast %11 : vector<1x256xf32> to vector<8x256xf32>
    %13 = arith.mulf %10, %12 : vector<8x256xf32>
    %c1_i32 = arith.constant 1 : i32
    %14 = tpu.dynamic_rotate %1 by %c1_i32 dim 1 : vector<8x256xf32>, i32 -> vector<8x256xf32>
    %c3 = arith.constant 3 : index
    %c0_6 = arith.constant 0 : index
    %15 = vector.load %arg2[%c3, %c0_6] : memref<9x256xf32, #tpu.memory_space<vmem>>, vector<1x256xf32>
    %16 = vector.broadcast %15 : vector<1x256xf32> to vector<8x256xf32>
    %17 = arith.mulf %14, %16 : vector<8x256xf32>
    %c255_i32 = arith.constant 255 : i32
    %18 = tpu.dynamic_rotate %1 by %c255_i32 dim 1 : vector<8x256xf32>, i32 -> vector<8x256xf32>
    %c5 = arith.constant 5 : index
    %c0_7 = arith.constant 0 : index
    %19 = vector.load %arg2[%c5, %c0_7] : memref<9x256xf32, #tpu.memory_space<vmem>>, vector<1x256xf32>
    %20 = vector.broadcast %19 : vector<1x256xf32> to vector<8x256xf32>
    %21 = arith.mulf %18, %20 : vector<8x256xf32>
    %c241_i32 = arith.constant 241 : i32
    %22 = tpu.dynamic_rotate %1 by %c241_i32 dim 1 : vector<8x256xf32>, i32 -> vector<8x256xf32>
    %c6 = arith.constant 6 : index
    %c0_8 = arith.constant 0 : index
    %23 = vector.load %arg2[%c6, %c0_8] : memref<9x256xf32, #tpu.memory_space<vmem>>, vector<1x256xf32>
    %24 = vector.broadcast %23 : vector<1x256xf32> to vector<8x256xf32>
    %25 = arith.mulf %22, %24 : vector<8x256xf32>
    %c240_i32 = arith.constant 240 : i32
    %26 = tpu.dynamic_rotate %1 by %c240_i32 dim 1 : vector<8x256xf32>, i32 -> vector<8x256xf32>
    %c7 = arith.constant 7 : index
    %c0_9 = arith.constant 0 : index
    %27 = vector.load %arg2[%c7, %c0_9] : memref<9x256xf32, #tpu.memory_space<vmem>>, vector<1x256xf32>
    %28 = vector.broadcast %27 : vector<1x256xf32> to vector<8x256xf32>
    %29 = arith.mulf %26, %28 : vector<8x256xf32>
    %c239_i32 = arith.constant 239 : i32
    %30 = tpu.dynamic_rotate %1 by %c239_i32 dim 1 : vector<8x256xf32>, i32 -> vector<8x256xf32>
    %c8 = arith.constant 8 : index
    %c0_10 = arith.constant 0 : index
    %31 = vector.load %arg2[%c8, %c0_10] : memref<9x256xf32, #tpu.memory_space<vmem>>, vector<1x256xf32>
    %32 = vector.broadcast %31 : vector<1x256xf32> to vector<8x256xf32>
    %33 = arith.mulf %30, %32 : vector<8x256xf32>
    %cst = arith.constant 0.000000e+00 : f32
    %34 = vector.broadcast %cst : f32 to vector<56x256xf32>
    %35 = tpu.concatenate %5, %9, %13, %17, %1, %21, %25, %29, %33, %34 in 0 : vector<8x256xf32>, vector<8x256xf32>, vector<8x256xf32>, vector<8x256xf32>, vector<8x256xf32>, vector<8x256xf32>, vector<8x256xf32>, vector<8x256xf32>, vector<8x256xf32>, vector<56x256xf32> -> vector<128x256xf32>
    %36 = arith.truncf %35 : vector<128x256xf32> to vector<128x256xbf16>
    %c0_11 = arith.constant 0 : index
    %c0_12 = arith.constant 0 : index
    %37 = vector.load %arg3[%c0_11, %c0_12] : memref<8x128xbf16, #tpu.memory_space<vmem>>, vector<8x128xbf16>
    %cst_13 = arith.constant dense<0.000000e+00> : vector<8x256xf32>
    %38 = tpu.matmul %37, %36, %cst_13 {dimension_numbers = #tpu.dot_dimension_numbers<[1], [0], [0], [1], [0, 0, 1, 1], [], []>} : vector<8x128xbf16>, vector<128x256xbf16>, vector<8x256xf32> -> vector<8x256xf32>
    %c0_14 = arith.constant 0 : index
    %c0_15 = arith.constant 0 : index
    %39 = vector.load %arg4[%c0_14, %c0_15] : memref<8x1xf32, #tpu.memory_space<vmem>>, vector<8x1xf32>
    %40 = vector.broadcast %39 : vector<8x1xf32> to vector<8x256xf32>
    %41 = arith.addf %38, %40 : vector<8x256xf32>
    %cst_16 = arith.constant dense<0xFF800000> : vector<256xf32>
    %42 = vector.multi_reduction <maximumf>, %41, %cst_16 [0] : vector<8x256xf32> to vector<256xf32>
    %43 = vector.shape_cast %42 : vector<256xf32> to vector<1x256xf32>
    %44 = vector.broadcast %43 : vector<1x256xf32> to vector<8x256xf32>
    %45 = arith.subf %41, %44 : vector<8x256xf32>
    %46 = math.exp %45 : vector<8x256xf32>
    %cst_17 = arith.constant dense<0.000000e+00> : vector<256xf32>
    %47 = vector.multi_reduction <add>, %46, %cst_17 [0] : vector<8x256xf32> to vector<256xf32>
    %48 = vector.shape_cast %47 : vector<256xf32> to vector<1x256xf32>
    %49 = arith.mulf %41, %46 : vector<8x256xf32>
    %50 = tpu.reciprocal %48 {approx = true} : vector<1x256xf32> -> vector<1x256xf32>
    %51 = vector.broadcast %50 : vector<1x256xf32> to vector<8x256xf32>
    %52 = arith.mulf %49, %51 : vector<8x256xf32>
    %c17_i32_18 = arith.constant 17 : i32
    %53 = tpu.dynamic_rotate %52 by %c17_i32_18 dim 1 : vector<8x256xf32>, i32 -> vector<8x256xf32>
    %c0_19 = arith.constant 0 : index
    %c0_20 = arith.constant 0 : index
    %54 = vector.load %arg2[%c0_19, %c0_20] : memref<9x256xf32, #tpu.memory_space<vmem>>, vector<1x256xf32>
    %55 = vector.broadcast %54 : vector<1x256xf32> to vector<8x256xf32>
    %56 = arith.mulf %53, %55 : vector<8x256xf32>
    %c16_i32_21 = arith.constant 16 : i32
    %57 = tpu.dynamic_rotate %52 by %c16_i32_21 dim 1 : vector<8x256xf32>, i32 -> vector<8x256xf32>
    %c1_22 = arith.constant 1 : index
    %c0_23 = arith.constant 0 : index
    %58 = vector.load %arg2[%c1_22, %c0_23] : memref<9x256xf32, #tpu.memory_space<vmem>>, vector<1x256xf32>
    %59 = vector.broadcast %58 : vector<1x256xf32> to vector<8x256xf32>
    %60 = arith.mulf %57, %59 : vector<8x256xf32>
    %c15_i32_24 = arith.constant 15 : i32
    %61 = tpu.dynamic_rotate %52 by %c15_i32_24 dim 1 : vector<8x256xf32>, i32 -> vector<8x256xf32>
    %c2_25 = arith.constant 2 : index
    %c0_26 = arith.constant 0 : index
    %62 = vector.load %arg2[%c2_25, %c0_26] : memref<9x256xf32, #tpu.memory_space<vmem>>, vector<1x256xf32>
    %63 = vector.broadcast %62 : vector<1x256xf32> to vector<8x256xf32>
    %64 = arith.mulf %61, %63 : vector<8x256xf32>
    %c1_i32_27 = arith.constant 1 : i32
    %65 = tpu.dynamic_rotate %52 by %c1_i32_27 dim 1 : vector<8x256xf32>, i32 -> vector<8x256xf32>
    %c3_28 = arith.constant 3 : index
    %c0_29 = arith.constant 0 : index
    %66 = vector.load %arg2[%c3_28, %c0_29] : memref<9x256xf32, #tpu.memory_space<vmem>>, vector<1x256xf32>
    %67 = vector.broadcast %66 : vector<1x256xf32> to vector<8x256xf32>
    %68 = arith.mulf %65, %67 : vector<8x256xf32>
    %c255_i32_30 = arith.constant 255 : i32
    %69 = tpu.dynamic_rotate %52 by %c255_i32_30 dim 1 : vector<8x256xf32>, i32 -> vector<8x256xf32>
    %c5_31 = arith.constant 5 : index
    %c0_32 = arith.constant 0 : index
    %70 = vector.load %arg2[%c5_31, %c0_32] : memref<9x256xf32, #tpu.memory_space<vmem>>, vector<1x256xf32>
    %71 = vector.broadcast %70 : vector<1x256xf32> to vector<8x256xf32>
    %72 = arith.mulf %69, %71 : vector<8x256xf32>
    %c241_i32_33 = arith.constant 241 : i32
    %73 = tpu.dynamic_rotate %52 by %c241_i32_33 dim 1 : vector<8x256xf32>, i32 -> vector<8x256xf32>
    %c6_34 = arith.constant 6 : index
    %c0_35 = arith.constant 0 : index
    %74 = vector.load %arg2[%c6_34, %c0_35] : memref<9x256xf32, #tpu.memory_space<vmem>>, vector<1x256xf32>
    %75 = vector.broadcast %74 : vector<1x256xf32> to vector<8x256xf32>
    %76 = arith.mulf %73, %75 : vector<8x256xf32>
    %c240_i32_36 = arith.constant 240 : i32
    %77 = tpu.dynamic_rotate %52 by %c240_i32_36 dim 1 : vector<8x256xf32>, i32 -> vector<8x256xf32>
    %c7_37 = arith.constant 7 : index
    %c0_38 = arith.constant 0 : index
    %78 = vector.load %arg2[%c7_37, %c0_38] : memref<9x256xf32, #tpu.memory_space<vmem>>, vector<1x256xf32>
    %79 = vector.broadcast %78 : vector<1x256xf32> to vector<8x256xf32>
    %80 = arith.mulf %77, %79 : vector<8x256xf32>
    %c239_i32_39 = arith.constant 239 : i32
    %81 = tpu.dynamic_rotate %52 by %c239_i32_39 dim 1 : vector<8x256xf32>, i32 -> vector<8x256xf32>
    %c8_40 = arith.constant 8 : index
    %c0_41 = arith.constant 0 : index
    %82 = vector.load %arg2[%c8_40, %c0_41] : memref<9x256xf32, #tpu.memory_space<vmem>>, vector<1x256xf32>
    %83 = vector.broadcast %82 : vector<1x256xf32> to vector<8x256xf32>
    %84 = arith.mulf %81, %83 : vector<8x256xf32>
    %cst_42 = arith.constant 0.000000e+00 : f32
    %85 = vector.broadcast %cst_42 : f32 to vector<56x256xf32>
    %86 = tpu.concatenate %56, %60, %64, %68, %52, %72, %76, %80, %84, %85 in 0 : vector<8x256xf32>, vector<8x256xf32>, vector<8x256xf32>, vector<8x256xf32>, vector<8x256xf32>, vector<8x256xf32>, vector<8x256xf32>, vector<8x256xf32>, vector<8x256xf32>, vector<56x256xf32> -> vector<128x256xf32>
    %87 = arith.truncf %86 : vector<128x256xf32> to vector<128x256xbf16>
    %c0_43 = arith.constant 0 : index
    %c0_44 = arith.constant 0 : index
    %88 = vector.load %arg5[%c0_43, %c0_44] : memref<8x128xbf16, #tpu.memory_space<vmem>>, vector<8x128xbf16>
    %cst_45 = arith.constant dense<0.000000e+00> : vector<8x256xf32>
    %89 = tpu.matmul %88, %87, %cst_45 {dimension_numbers = #tpu.dot_dimension_numbers<[1], [0], [0], [1], [0, 0, 1, 1], [], []>} : vector<8x128xbf16>, vector<128x256xbf16>, vector<8x256xf32> -> vector<8x256xf32>
    %c0_46 = arith.constant 0 : index
    %c0_47 = arith.constant 0 : index
    %90 = vector.load %arg6[%c0_46, %c0_47] : memref<8x1xf32, #tpu.memory_space<vmem>>, vector<8x1xf32>
    %91 = vector.broadcast %90 : vector<8x1xf32> to vector<8x256xf32>
    %92 = arith.addf %89, %91 : vector<8x256xf32>
    %cst_48 = arith.constant dense<0xFF800000> : vector<256xf32>
    %93 = vector.multi_reduction <maximumf>, %92, %cst_48 [0] : vector<8x256xf32> to vector<256xf32>
    %94 = vector.shape_cast %93 : vector<256xf32> to vector<1x256xf32>
    %95 = vector.broadcast %94 : vector<1x256xf32> to vector<8x256xf32>
    %96 = arith.subf %92, %95 : vector<8x256xf32>
    %97 = math.exp %96 : vector<8x256xf32>
    %cst_49 = arith.constant dense<0.000000e+00> : vector<256xf32>
    %98 = vector.multi_reduction <add>, %97, %cst_49 [0] : vector<8x256xf32> to vector<256xf32>
    %99 = vector.shape_cast %98 : vector<256xf32> to vector<1x256xf32>
    %100 = arith.mulf %92, %97 : vector<8x256xf32>
    %101 = tpu.reciprocal %99 {approx = true} : vector<1x256xf32> -> vector<1x256xf32>
    %102 = vector.broadcast %101 : vector<1x256xf32> to vector<8x256xf32>
    %103 = arith.mulf %100, %102 : vector<8x256xf32>
    %c0_50 = arith.constant 0 : index
    %c0_51 = arith.constant 0 : index
    %c0_52 = arith.constant 0 : index
    %104 = vector.load %arg7[%c0_50, %c0_51, %c0_52] : memref<1x8x256xf32, #tpu.memory_space<vmem>>, vector<1x8x256xf32>
    %105 = vector.shape_cast %104 : vector<1x8x256xf32> to vector<8x256xf32>
    %106 = vector.shape_cast %103 : vector<8x256xf32> to vector<1x8x256xf32>
    tpu.vector_store %arg7[%c0_50, %c0_51, %c0_52], %106 {strides = array<i32>} : memref<1x8x256xf32, #tpu.memory_space<vmem>>, vector<1x8x256xf32>,
    return
  }
  func.func @transform_0(%arg0: i32) -> (i32, i32, i32) {
    %c0_i32 = arith.constant 0 : i32
    %c0_i32_0 = arith.constant 0 : i32
    %c0_i32_1 = arith.constant 0 : i32
    return %arg0, %c0_i32, %c0_i32_0 : i32, i32, i32
  }
  func.func @transform_1(%arg0: i32) -> (i32, i32) {
    %c0_i32 = arith.constant 0 : i32
    %c0_i32_0 = arith.constant 0 : i32
    %c0_i32_1 = arith.constant 0 : i32
    return %c0_i32, %c0_i32_0 : i32, i32
  }
  func.func @transform_2(%arg0: i32) -> (i32, i32) {
    %c0_i32 = arith.constant 0 : i32
    %c0_i32_0 = arith.constant 0 : i32
    %c0_i32_1 = arith.constant 0 : i32
    return %c0_i32, %c0_i32_0 : i32, i32
  }
  func.func @transform_3(%arg0: i32) -> (i32, i32) {
    %c0_i32 = arith.constant 0 : i32
    %c0_i32_0 = arith.constant 0 : i32
    %c0_i32_1 = arith.constant 0 : i32
    return %c0_i32, %c0_i32_0 : i32, i32
  }
  func.func @transform_4(%arg0: i32) -> (i32, i32) {
    %c0_i32 = arith.constant 0 : i32
    %c0_i32_0 = arith.constant 0 : i32
    %c0_i32_1 = arith.constant 0 : i32
    return %c0_i32, %c0_i32_0 : i32, i32
  }
  func.func @transform_5(%arg0: i32) -> (i32, i32) {
    %c0_i32 = arith.constant 0 : i32
    %c0_i32_0 = arith.constant 0 : i32
    %c0_i32_1 = arith.constant 0 : i32
    return %c0_i32, %c0_i32_0 : i32, i32
  }
  func.func @transform_6(%arg0: i32) -> (i32, i32, i32) {
    %c0_i32 = arith.constant 0 : i32
    %c0_i32_0 = arith.constant 0 : i32
    %c0_i32_1 = arith.constant 0 : i32
    return %arg0, %c0_i32, %c0_i32_0 : i32, i32, i32
  }
}

</mosaic_0001>

<bundles_post_ra>
// kernel: upsampler_forward.1
= control target key start
LH: loop header
LB: loop body
LE: loop exit
PB: predicated region body
PF: predicated region fallthrough
CT: control target
= control target key end

     0   :  { %s770_s21 = smov 0   ;;  %s1054_s0 = inlined_call_operand.vmem [shape: f32[2,8,256], index: 0, kind: input, shape index: {}]   ;;  %s1055_s1 = inlined_call_operand.vmem [shape: f32[9,256], index: 1, kind: input, shape index: {}]   ;;  %s1056_s2 = inlined_call_operand.vmem [shape: bf16[8,128], index: 2, kind: input, shape index: {}]   ;;  %s1057_s3 = inlined_call_operand.vmem [shape: f32[8,1], index: 3, kind: input, shape index: {}]   ;;  %s1058_s4 = inlined_call_operand.vmem [shape: bf16[8,128], index: 4, kind: input, shape index: {}]   ;;  %s1059_s5 = inlined_call_operand.vmem [shape: f32[8,1], index: 5, kind: input, shape index: {}]   ;;  %s1060_s6 = inlined_call_operand.vmem [shape: f32[2,8,256], index: 6, kind: output, shape index: {}]  }
   0x1 LB: > { %s663_s22 = sadd.s32 4294967295, %s724_s21   ;;  %p667_p0 = scmp.ge.s32.totalorder %s724_s21, 1  ;;  %s724_s21 = sphi %s770_s21, %s16_s21  }
   0x2   : > { %p212_p1 = scmp.lt.s32.totalorder %s724_s21, 3 }
   0x4   : > { %p213_p2 = pnand %p667_p0, %p212_p1 }
   0x5   : > { %p242_p3 = scmp.lt.s32.totalorder (!%p213_p2), %s663_s22, 1  ;;  %s726_s27 = smov (!%p213_p2), 113  }
   0x6   : > { %216 = sbr.rel (%p213_p2) target bundleno = 686 (0x2ae), region = 44  ;;  %s727_s28 = smov (!%p213_p2), 111  }
   0x7   : > { %s728_s29 = smov (!%p213_p2), 112   ;;  %s729_s30 = smov (!%p213_p2), 127  }
   0x8   : > { %s730_s7 = smov (!%p213_p2), 15   ;;  %s731_s8 = smov (!%p213_p2), 1  }
   0x9   : > { %s732_s9 = smov (!%p213_p2), 17   ;;  %s733_s10 = smov (!%p213_p2), 16  }
   0xb   : > { %s1062_s22 = smov (!%p242_p3, %s663_s22), 1  ;;  %v258_v3 = vlaneseq  ;;  %v827_v8 = vld [vmem:[%s1055_s1 + $0x10] ss:$8 sm:$0x3]  ;;  %v395_v43 = vld [vmem:[%s1057_s3] sm:$0xff]  ;;  %v734_v48 = vmov 0  }
   0xc   : > { %s681_s23 = sshll.u32 %s1062_s22, 4  ;;  %v832_v9 = vld [vmem:[%s1055_s1 + $0x7] ss:$8 sm:$0x3]  ;;  %v377_v11 = vperm.slane %v827_v8, 0  ;;  %v378_v12 = vperm.slane %v827_v8, 1  ;;  %700 = vset.pattern.permute.xlu1 %v734_v48  ;;  %701 = vset.pattern.permute.xlu0 %v734_v48 }
   0xd   : > { %s246_s26 = scalar_lea.vmem %s1054_s0, %s681_s23  ;;  %v822_v6 = vand.u32 127, %v258_v3  ;;  %v838_v10 = vld [vmem:[%s1055_s1 + $0x6] ss:$8 sm:$0x3]  ;;  %v361_v13 = vperm.slane %v832_v9, 0  ;;  %v362_v14 = vperm.slane %v832_v9, 1 }
   0xe   : > { %v786_v0 = vld [vmem:[%s246_s26] sm:$0xff]  ;;  %v794_v1 = vld [vmem:[%s246_s26 + $0x8] sm:$0xff]  ;;  %v345_v17 = vperm.slane %v838_v10, 0  ;;  %v346_v18 = vperm.slane %v838_v10, 1 }
   0xf   : > { %335 = vrot.lane.b32.xlu1 %v786_v0, %s726_s27  ;;  %367 = vrot.lane.b32.xlu0 %v786_v0, %s727_s28  ;;  %vm355_vm0 = vcmp.lt.s32.totalorder %v822_v6, 112  ;;  %vm339_vm1 = vcmp.lt.s32.totalorder %v822_v6, 113  ;;  %vm371_vm2 = vcmp.lt.s32.totalorder %v822_v6, 111  ;;  %v871_v29 = vld [vmem:[%s1055_s1 + $0x5] ss:$8 sm:$0x3] }
  0x10   : > { %351 = vrot.lane.b32.xlu2 %v786_v0, %s728_s29  ;;  %vm323_vm3 = vcmp.lt.s32.totalorder %v822_v6, 127  ;;  %v329_v35 = vperm.slane %v871_v29, 0  ;;  %v330_v36 = vperm.slane %v871_v29, 1  ;;  %v894_v46 = vld [vmem:[%s1055_s1 + $0x3] ss:$8 sm:$0x3] }
  0x11   : > { %v899_v47 = vld [vmem:[%s1055_s1 + $0x2] ss:$8 sm:$0x3]  ;;  %vm307_vm4 = vcmp.lt.s32.totalorder %v822_v6, 1  ;;  %v313_v51 = vperm.slane %v894_v46, 0  ;;  %v314_v53 = vperm.slane %v894_v46, 1 }
  0x12   : > { %vm291_vm5 = vcmp.lt.s32.totalorder %v822_v6, 15  ;;  %v297_v54 = vperm.slane %v899_v47, 0  ;;  %v298_v55 = vperm.slane %v899_v47, 1  ;;  %vm260_vm6 = vcmp.lt.s32.totalorder %v822_v6, 17  ;;  %v538_v8 = vld [vmem:[%s1059_s5] sm:$0xff] }
  0x13   : > { %vm275_vm7 = vcmp.lt.s32.totalorder %v822_v6, 16 }
  0x17   : > { %337 = vrot.lane.b32.xlu1 %v794_v1, %s726_s27  ;;  %369 = vrot.lane.b32.xlu0 %v794_v1, %s727_s28 }
  0x18   : > { %353 = vrot.lane.b32.xlu2 %v794_v1, %s728_s29 }
  0x1f   : > { %321 = vrot.lane.b32.xlu1 %v794_v1, %s729_s30  ;;  %319 = vrot.lane.b32.xlu0 %v786_v0, %s729_s30 }
  0x20   : > { %287 = vrot.lane.b32.xlu2 %v786_v0, %s730_s7 }
  0x27   : > { %303 = vrot.lane.b32.xlu1 %v786_v0, %s731_s8  ;;  %289 = vrot.lane.b32.xlu0 %v794_v1, %s730_s7 }
  0x28   : > { %305 = vrot.lane.b32.xlu2 %v794_v1, %s731_s8 }
  0x2f   : > { %256 = vrot.lane.b32.xlu1 %v794_v1, %s732_s9  ;;  %254 = vrot.lane.b32.xlu0 %v786_v0, %s732_s9 }
  0x30   : > { %271 = vrot.lane.b32.xlu2 %v786_v0, %s733_s10 }
  0x37   : > { %273 = vrot.lane.b32.xlu0 %v794_v1, %s733_s10  ;;  %398 = vperm.xlu1 %700, %v395_v43  }
  0x6a   : > { %v352_v2 = vpop.permute.xlu2 %351 }
  0x72   : > { %v354_v7 = vpop.permute.xlu2 %353 }
  0x73   : > { %v356_v15 = vsel %vm355_vm0, %v352_v2, %v354_v7  ;;  %v357_v16 = vsel %vm355_vm0, %v354_v7, %v352_v2  ;;  %v933_v7 = vld [vmem:[%s1055_s1 + $0x1] ss:$8 sm:$0x3] }
  0x74   : > { %v365_v27 = vmul.f32 %v361_v13, %v356_v15  ;;  %v366_v28 = vmul.f32 %v362_v14, %v357_v16 }
  0x7a   : > { %v288_v34 = vpop.permute.xlu2 %287 }
  0x81   : > { %v336_v4 = vpop.permute.xlu1 %335  ;;  %v368_v5 = vpop.permute.xlu0 %367 }
  0x82   : > { %v306_v52 = vpop.permute.xlu2 %305 }
  0x89   : > { %v338_v19 = vpop.permute.xlu1 %337  ;;  %v370_v20 = vpop.permute.xlu0 %369 }
  0x8a   : > { %v340_v21 = vsel %vm339_vm1, %v336_v4, %v338_v19  ;;  %v341_v22 = vsel %vm339_vm1, %v338_v19, %v336_v4  ;;  %v372_v23 = vsel %vm371_vm2, %v368_v5, %v370_v20  ;;  %v373_v24 = vsel %vm371_vm2, %v370_v20, %v368_v5  ;;  %v928_v5 = vld [vmem:[%s1055_s1] ss:$8 sm:$0x3]  ;;  %v272_v20 = vpop.permute.xlu2 %271 }
  0x8b   : > { %v381_v25 = vmul.f32 %v377_v11, %v372_v23  ;;  %v382_v26 = vmul.f32 %v378_v12, %v373_v24  ;;  %v349_v30 = vmul.f32 %v345_v17, %v340_v21  ;;  %v350_v31 = vmul.f32 %v346_v18, %v341_v22 }
  0x8c   : > { %v265_v16 = vperm.slane %v928_v5, 0  ;;  %v266_v19 = vperm.slane %v928_v5, 1  ;;  %v281_v21 = vperm.slane %v933_v7, 0  ;;  %v282_v22 = vperm.slane %v933_v7, 1  ;;  %v537_v7 = vld [vmem:[%s1058_s4] sm:$0xf] }
  0x8d   : > { %v391_v32 = vpack.c.bf16 0.0, %v381_v25  ;;  %v392_v33 = vpack.c.bf16 0.0, %v382_v26  ;;  %v389_v39 = vpack.c.bf16 %v365_v27, %v349_v30  ;;  %v390_v40 = vpack.c.bf16 %v366_v28, %v350_v31 }
  0x8f   : > { %404 = vmatpush.bf16.msra.mxu0 %v391_v32  ;;  %417 = vmatpush.bf16.msra.mxu1 %v392_v33 }
  0x91   : > { %v322_v37 = vpop.permute.xlu1 %321  ;;  %v320_v38 = vpop.permute.xlu0 %319 }
  0x92   : > { %v324_v41 = vsel %vm323_vm3, %v320_v38, %v322_v37  ;;  %v325_v42 = vsel %vm323_vm3, %v322_v37, %v320_v38  ;;  %v394_v37 = vld [vmem:[%s1056_s2] sm:$0xf] }
  0x93   : > { %v333_v44 = vmul.f32 %v329_v35, %v324_v41  ;;  %v334_v45 = vmul.f32 %v330_v36, %v325_v42  ;;  %405 = vmatpush.bf16.msra.mxu0 %v389_v39  ;;  %418 = vmatpush.bf16.msra.mxu1 %v390_v40 }
  0x95   : > { %v387_v49 = vpack.c.bf16 %v333_v44, %v786_v0  ;;  %v388_v50 = vpack.c.bf16 %v334_v45, %v794_v1 }
  0x97   : > { %406 = vmatpush.bf16.msra.mxu0 %v387_v49  ;;  %419 = vmatpush.bf16.msra.mxu1 %v388_v50 }
  0x99   : > { %v304_v56 = vpop.permute.xlu1 %303  ;;  %v290_v57 = vpop.permute.xlu0 %289 }
  0x9a   : > { %v308_v58 = vsel %vm307_vm4, %v304_v56, %v306_v52  ;;  %v309_v59 = vsel %vm307_vm4, %v306_v52, %v304_v56  ;;  %v292_v60 = vsel %vm291_vm5, %v288_v34, %v290_v57  ;;  %v293_v61 = vsel %vm291_vm5, %v290_v57, %v288_v34 }
  0x9b   : > { %v317_v62 = vmul.f32 %v313_v51, %v309_v59  ;;  %v318_v63 = vmul.f32 %v314_v53, %v308_v58  ;;  %v301_v0 = vmul.f32 %v297_v54, %v293_v61  ;;  %v302_v1 = vmul.f32 %v298_v55, %v292_v60 }
  0x9d   : > { %v385_v2 = vpack.c.bf16 %v317_v62, %v301_v0  ;;  %v386_v3 = vpack.c.bf16 %v318_v63, %v302_v1 }
  0x9f   : > { %407 = vmatpush.bf16.msra.mxu0 %v385_v2  ;;  %420 = vmatpush.bf16.msra.mxu1 %v386_v3 }
  0xa1   : > { %v255_v4 = vpop.permute.xlu0 %254  ;;  %v257_v15 = vpop.permute.xlu1 %256 }
  0xa2   : > { %v261_v23 = vsel %vm260_vm6, %v255_v4, %v257_v15  ;;  %v262_v24 = vsel %vm260_vm6, %v257_v15, %v255_v4 }
  0xa3   : > { %v269_v28 = vmul.f32 %v265_v16, %v262_v24  ;;  %v270_v30 = vmul.f32 %v266_v19, %v261_v23 }
  0xa9   : > { %v274_v25 = vpop.permute.xlu0 %273  ;;  %v399_v38 = vpop.permute.xlu1 %398 }
  0xaa   : > { %v276_v26 = vsel %vm275_vm7, %v272_v20, %v274_v25  ;;  %v277_v27 = vsel %vm275_vm7, %v274_v25, %v272_v20 }
  0xab   : > { %v285_v31 = vmul.f32 %v281_v21, %v277_v27  ;;  %v286_v32 = vmul.f32 %v282_v22, %v276_v26 }
  0xad   : > { %v383_v33 = vpack.c.bf16 %v285_v31, %v269_v28  ;;  %v384_v34 = vpack.c.bf16 %v286_v32, %v270_v30 }
  0xaf   : > { %408 = vmatpush.bf16.msra.mxu0 %v383_v33  ;;  %421 = vmatpush.bf16.msra.mxu1 %v384_v34 }
  0xb2   : > { %409 = vmatmul.bf16.vlgmr.msra.gmra.mxu0 %v394_v37  ;;  %422 = vmatmul.bf16.vlgmr.msra.gmra.mxu1 %v394_v37 }
 0x12f   : > { %v410_v39 = vpop.f32.mrf.mxu0  ;;  %v423_v40 = vpop.f32.mrf.mxu1 }
 0x130   : > { %v411_v41 = vadd.f32 %v410_v39, %v399_v38  ;;  %v424_v42 = vadd.f32 %v423_v40, %v399_v38 }
 0x132   : > { %v427_v43 = vrot.slane %v411_v41, 4  ;;  %v433_v44 = vrot.slane %v424_v42, 4 }
 0x134   : > { %v428_v45 = vmax.f32 %v411_v41, %v427_v43  ;;  %v434_v48 = vmax.f32 %v424_v42, %v433_v44 }
 0x136   : > { %v429_v49 = vrot.slane %v428_v45, 2  ;;  %v435_v50 = vrot.slane %v434_v48, 2 }
 0x137   : > { %v412_v52 = vpop.f32.mrf.mxu0  ;;  %v425_v56 = vpop.f32.mrf.mxu1 }
 0x138   : > { %v430_v57 = vmax.f32 %v428_v45, %v429_v49  ;;  %v436_v58 = vmax.f32 %v434_v48, %v435_v50 }
 0x13a   : > { %v431_v59 = vrot.slane %v430_v57, 1  ;;  %v437_v60 = vrot.slane %v436_v58, 1 }
 0x13c   : > { %v432_v61 = vmax.f32 %v430_v57, %v431_v59  ;;  %v438_v62 = vmax.f32 %v436_v58, %v437_v60 }
 0x13e   : > { %v439_v63 = vsub.f32 %v411_v41, %v432_v61  ;;  %v440_v0 = vsub.f32 %v424_v42, %v438_v62 }
 0x140   : > { %v441_v1 = vmul.f32 1.442695, %v439_v63  ;;  %v443_v2 = vmul.f32 1.442695, %v440_v0 }
 0x142   : > { %702 = vpow2.f32 %v441_v1 }
 0x143   : > { %704 = vpow2.f32 %v443_v2 }
 0x148   : > { %v703_v3 = vpop.eup %702 }
 0x149   : > { %v705_v4 = vpop.eup %704  ;;  %v445_v15 = vrot.slane %v703_v3, 4  ;;  %v457_v34 = vmul.f32 %v703_v3, %v411_v41 }
 0x14a   : > { %v451_v20 = vrot.slane %v705_v4, 4  ;;  %v458_v38 = vmul.f32 %v705_v4, %v424_v42 }
 0x14b   : > { %v446_v23 = vadd.f32 %v703_v3, %v445_v15 }
 0x14c   : > { %v452_v24 = vadd.f32 %v705_v4, %v451_v20 }
 0x14d   : > { %v447_v25 = vrot.slane %v446_v23, 2 }
 0x14e   : > { %v453_v26 = vrot.slane %v452_v24, 2 }
 0x14f   : > { %v448_v27 = vadd.f32 %v447_v25, %v446_v23 }
 0x150   : > { %v454_v28 = vadd.f32 %v453_v26, %v452_v24 }
 0x151   : > { %v449_v30 = vrot.slane %v448_v27, 1 }
 0x152   : > { %v455_v31 = vrot.slane %v454_v28, 1 }
 0x153   : > { %v450_v32 = vadd.f32 %v449_v30, %v448_v27 }
 0x154   : > { %v456_v33 = vadd.f32 %v455_v31, %v454_v28 }
 0x155   : > { %706 = vrcp.f32 %v450_v32 }
 0x156   : > { %708 = vrcp.f32 %v456_v33 }
 0x15b   : > { %v707_v37 = vpop.eup %706 }
 0x15c   : > { %v709_v39 = vpop.eup %708  ;;  %v461_v40 = vmul.f32 %v707_v37, %v457_v34 }
 0x15d   : > { %v462_v43 = vmul.f32 %v709_v39, %v458_v38 }
 0x15e   : > { %503 = vrot.lane.b32.xlu1 %v461_v40, %s726_s27  ;;  %519 = vrot.lane.b32.xlu2 %v461_v40, %s727_s28 }
 0x15f   : > { %521 = vrot.lane.b32.xlu0 %v462_v43, %s727_s28 }
 0x166   : > { %513 = vrot.lane.b32.xlu1 %v462_v43, %s728_s29  ;;  %505 = vrot.lane.b32.xlu2 %v462_v43, %s726_s27 }
 0x167   : > { %511 = vrot.lane.b32.xlu0 %v461_v40, %s728_s29 }
 0x16e   : > { %479 = vrot.lane.b32.xlu1 %v461_v40, %s730_s7  ;;  %495 = vrot.lane.b32.xlu2 %v461_v40, %s729_s30 }
 0x16f   : > { %497 = vrot.lane.b32.xlu0 %v462_v43, %s729_s30 }
 0x176   : > { %489 = vrot.lane.b32.xlu1 %v462_v43, %s731_s8  ;;  %481 = vrot.lane.b32.xlu2 %v462_v43, %s730_s7 }
 0x177   : > { %487 = vrot.lane.b32.xlu0 %v461_v40, %s731_s8 }
 0x17e   : > { %471 = vrot.lane.b32.xlu1 %v461_v40, %s733_s10  ;;  %463 = vrot.lane.b32.xlu2 %v461_v40, %s732_s9 }
 0x17f   : > { %465 = vrot.lane.b32.xlu0 %v462_v43, %s732_s9  ;;  %s251_s9 = scalar_lea.vmem %s1060_s6, %s681_s23 }
 0x186   : > { %473 = vrot.lane.b32.xlu2 %v462_v43, %s733_s10 }
 0x187   : > { %541 = vperm.xlu0 %701, %v538_v8  }
 0x1b8   : > { %v520_v41 = vpop.permute.xlu2 %519 }
 0x1c0   : > { %v506_v42 = vpop.permute.xlu2 %505 }
 0x1c8   : > { %v496_v48 = vpop.permute.xlu2 %495 }
 0x1d0   : > { %v504_v44 = vpop.permute.xlu1 %503  ;;  %v482_v3 = vpop.permute.xlu2 %481 }
 0x1d1   : > { %v522_v45 = vpop.permute.xlu0 %521  ;;  %v507_v59 = vsel %vm339_vm1, %v504_v44, %v506_v42  ;;  %v508_v60 = vsel %vm339_vm1, %v506_v42, %v504_v44 }
 0x1d2   : > { %v523_v49 = vsel %vm371_vm2, %v520_v41, %v522_v45  ;;  %v524_v50 = vsel %vm371_vm2, %v522_v45, %v520_v41  ;;  %v510_v0 = vmul.f32 %v508_v60, %v346_v18 }
 0x1d3   : > { %v525_v52 = vmul.f32 %v523_v49, %v377_v11  ;;  %v526_v56 = vmul.f32 %v524_v50, %v378_v12  ;;  %v509_v12 = vmul.f32 %v507_v59, %v345_v17 }
 0x1d5   : > { %v535_v57 = vpack.c.bf16 0.0, %v525_v52  ;;  %v536_v58 = vpack.c.bf16 0.0, %v526_v56 }
 0x1d7   : > { %547 = vmatpush.bf16.msra.mxu2 %v535_v57  ;;  %560 = vmatpush.bf16.msra.mxu3 %v536_v58 }
 0x1d8   : > { %v514_v61 = vpop.permute.xlu1 %513  ;;  %v464_v24 = vpop.permute.xlu2 %463 }
 0x1d9   : > { %v512_v62 = vpop.permute.xlu0 %511 }
 0x1da   : > { %v515_v63 = vsel %vm355_vm0, %v512_v62, %v514_v61  ;;  %v516_v11 = vsel %vm355_vm0, %v514_v61, %v512_v62 }
 0x1db   : > { %v517_v1 = vmul.f32 %v515_v63, %v361_v13  ;;  %v518_v2 = vmul.f32 %v516_v11, %v362_v14 }
 0x1dd   : > { %v533_v4 = vpack.c.bf16 %v517_v1, %v509_v12  ;;  %v534_v15 = vpack.c.bf16 %v518_v2, %v510_v0 }
 0x1df   : > { %548 = vmatpush.bf16.msra.mxu2 %v533_v4  ;;  %561 = vmatpush.bf16.msra.mxu3 %v534_v15 }
 0x1e0   : > { %v480_v20 = vpop.permute.xlu1 %479  ;;  %v474_v37 = vpop.permute.xlu2 %473 }
 0x1e1   : > { %v498_v23 = vpop.permute.xlu0 %497  ;;  %v483_v25 = vsel %vm291_vm5, %v480_v20, %v482_v3  ;;  %v484_v26 = vsel %vm291_vm5, %v482_v3, %v480_v20 }
 0x1e2   : > { %v499_v17 = vsel %vm323_vm3, %v496_v48, %v498_v23  ;;  %v500_v10 = vsel %vm323_vm3, %v498_v23, %v496_v48 }
 0x1e3   : > { %v501_v13 = vmul.f32 %v499_v17, %v329_v35  ;;  %v502_v9 = vmul.f32 %v500_v10, %v330_v36  ;;  %v485_v35 = vmul.f32 %v484_v26, %v297_v54  ;;  %v486_v36 = vmul.f32 %v483_v25, %v298_v55 }
 0x1e5   : > { %v531_v14 = vpack.c.bf16 %v501_v13, %v461_v40  ;;  %v532_v18 = vpack.c.bf16 %v502_v9, %v462_v43 }
 0x1e7   : > { %549 = vmatpush.bf16.msra.mxu2 %v531_v14  ;;  %562 = vmatpush.bf16.msra.mxu3 %v532_v18 }
 0x1e8   : > { %v490_v27 = vpop.permute.xlu1 %489 }
 0x1e9   : > { %v488_v28 = vpop.permute.xlu0 %487 }
 0x1ea   : > { %v491_v30 = vsel %vm307_vm4, %v488_v28, %v490_v27  ;;  %v492_v29 = vsel %vm307_vm4, %v490_v27, %v488_v28 }
 0x1eb   : > { %v493_v31 = vmul.f32 %v492_v29, %v313_v51  ;;  %v494_v32 = vmul.f32 %v491_v30, %v314_v53 }
 0x1ed   : > { %v529_v33 = vpack.c.bf16 %v493_v31, %v485_v35  ;;  %v530_v34 = vpack.c.bf16 %v494_v32, %v486_v36 }
 0x1ef   : > { %550 = vmatpush.bf16.msra.mxu2 %v529_v33  ;;  %563 = vmatpush.bf16.msra.mxu3 %v530_v34 }
 0x1f0   : > { %v472_v38 = vpop.permute.xlu1 %471 }
 0x1f1   : > { %v475_v39 = vsel %vm275_vm7, %v472_v38, %v474_v37  ;;  %v476_v54 = vsel %vm275_vm7, %v474_v37, %v472_v38  ;;  %v466_v47 = vpop.permute.xlu0 %465 }
 0x1f2   : > { %v477_v55 = vmul.f32 %v476_v54, %v281_v21  ;;  %v478_v46 = vmul.f32 %v475_v39, %v282_v22  ;;  %v467_v51 = vsel %vm260_vm6, %v464_v24, %v466_v47  ;;  %v468_v53 = vsel %vm260_vm6, %v466_v47, %v464_v24 }
 0x1f3   : > { %v469_v40 = vmul.f32 %v468_v53, %v265_v16  ;;  %v470_v43 = vmul.f32 %v467_v51, %v266_v19 }
 0x1f5   : > { %v527_v41 = vpack.c.bf16 %v477_v55, %v469_v40  ;;  %v528_v42 = vpack.c.bf16 %v478_v46, %v470_v43 }
 0x1f7   : > { %551 = vmatpush.bf16.msra.mxu2 %v527_v41  ;;  %564 = vmatpush.bf16.msra.mxu3 %v528_v42 }
 0x1f9   : > { %v542_v21 = vpop.permute.xlu0 %541 }
 0x1fa   : > { %552 = vmatmul.bf16.vlgmr.msra.gmra.mxu2 %v537_v7  ;;  %565 = vmatmul.bf16.vlgmr.msra.gmra.mxu3 %v537_v7 }
 0x27d   : > { %v553_v22 = vpop.f32.mrf.mxu2  ;;  %v566_v6 = vpop.f32.mrf.mxu3 }
 0x27e   : > { %v554_v44 = vadd.f32 %v553_v22, %v542_v21  ;;  %v567_v45 = vadd.f32 %v566_v6, %v542_v21 }
 0x280   : > { %v570_v48 = vrot.slane %v554_v44, 4  ;;  %v576_v16 = vrot.slane %v567_v45, 4 }
 0x282   : > { %v571_v49 = vmax.f32 %v554_v44, %v570_v48  ;;  %v577_v5 = vmax.f32 %v567_v45, %v576_v16 }
 0x284   : > { %v572_v19 = vrot.slane %v571_v49, 2  ;;  %v578_v50 = vrot.slane %v577_v5, 2 }
 0x285   : > { %v555_v52 = vpop.f32.mrf.mxu2  ;;  %v568_v56 = vpop.f32.mrf.mxu3 }
 0x286   : > { %v573_v57 = vmax.f32 %v571_v49, %v572_v19  ;;  %v579_v58 = vmax.f32 %v577_v5, %v578_v50 }
 0x288   : > { %v574_v59 = vrot.slane %v573_v57, 1  ;;  %v580_v60 = vrot.slane %v579_v58, 1 }
 0x28a   : > { %v575_v61 = vmax.f32 %v573_v57, %v574_v59  ;;  %v581_v62 = vmax.f32 %v579_v58, %v580_v60 }
 0x28c   : > { %v582_v63 = vsub.f32 %v554_v44, %v575_v61  ;;  %v583_v11 = vsub.f32 %v567_v45, %v581_v62 }
 0x28e   : > { %v584_v8 = vmul.f32 1.442695, %v582_v63  ;;  %v586_v12 = vmul.f32 1.442695, %v583_v11 }
 0x290   : > { %710 = vpow2.f32 %v584_v8 }
 0x291   : > { %712 = vpow2.f32 %v586_v12 }
 0x296   : > { %v711_v0 = vpop.eup %710 }
 0x297   : > { %v713_v1 = vpop.eup %712  ;;  %v588_v2 = vrot.slane %v711_v0, 4  ;;  %v600_v24 = vmul.f32 %v711_v0, %v554_v44 }
 0x298   : > { %v594_v3 = vrot.slane %v713_v1, 4  ;;  %v601_v26 = vmul.f32 %v713_v1, %v567_v45 }
 0x299   : > { %v589_v4 = vadd.f32 %v711_v0, %v588_v2 }
 0x29a   : > { %v595_v15 = vadd.f32 %v713_v1, %v594_v3 }
 0x29b   : > { %v590_v20 = vrot.slane %v589_v4, 2 }
 0x29c   : > { %v596_v23 = vrot.slane %v595_v15, 2 }
 0x29d   : > { %v591_v17 = vadd.f32 %v590_v20, %v589_v4 }
 0x29e   : > { %v597_v10 = vadd.f32 %v596_v23, %v595_v15 }
 0x29f   : > { %v592_v13 = vrot.slane %v591_v17, 1 }
 0x2a0   : > { %v598_v9 = vrot.slane %v597_v10, 1 }
 0x2a1   : > { %v593_v14 = vadd.f32 %v592_v13, %v591_v17 }
 0x2a2   : > { %v599_v18 = vadd.f32 %v598_v9, %v597_v10 }
 0x2a3   : > { %714 = vrcp.f32 %v593_v14 }
 0x2a4   : > { %716 = vrcp.f32 %v599_v18 }
 0x2a9   : > { %v715_v25 = vpop.eup %714 }
 0x2aa   : > { %v717_v27 = vpop.eup %716  ;;  %v604_v28 = vmul.f32 %v715_v25, %v600_v24 }
 0x2ab   : > { %v605_v30 = vmul.f32 %v717_v27, %v601_v26 }
 0x2ac   : > { %606 = vst [vmem:[%s251_s9] sm:$0xff] %v604_v28 }
 0x2ad   : > { %607 = vst [vmem:[%s251_s9 + $0x8] sm:$0xff] %v605_v30 }
 0x2ae PF: > { %s16_s21 = sadd.s32 1, %s724_s21  }
 0x2af   : > { %p13_p4 = scmp.ge.s32.totalorder %s16_s21, 4  }
 0x2b1   :  { %15 = sbr.rel (!%p13_p4) target bundleno = 1 (0x1), region = 81 }

</bundles_post_ra>
